<compile_context>
chip_gen: v7x
topology: tpu7x:2x2x1
jax: 0.10.0
libtpu: 0.0.40
codegen_flags: <defaults>
</compile_context>

<pallas_src>
import functools
import math

import jax
import jax.numpy as jnp
import numpy as np
from jax.experimental import pallas as pl
from jax.experimental.pallas import tpu as pltpu


def _mha_kernel(x_ref, w_all_ref, b_all_ref, wfc_ref, o_ref, *,
                n_heads, dim_attn, dim_val):
    """One grid step handles Bt batch elements.

    x_ref     : (Bt, S, Dv)  f32
    w_all_ref : (Dv, 2*H*Da + H*Dv)  bf16   columns = [q(h*Da+a) | k(h*Da+a) | v(h*Dv+d)]
    b_all_ref : (1,  2*H*Da + H*Dv)  f32
    wfc_ref   : (H*Dv, Dv)  bf16            rows h*Dv+d == Wfc[:, d*H+h]
    o_ref     : (Bt, S, Dv)
    """
    H, Da, Dv = n_heads, dim_attn, dim_val
    Bt, S, _ = x_ref.shape

    # ---- fused Q/K/V projection for all heads: one wide matmul + one bias add ----
    x2 = x_ref[...].reshape(Bt * S, Dv).astype(jnp.bfloat16)        # layout-safe reshape
    qkv = jnp.dot(x2, w_all_ref[...],
                  preferred_element_type=jnp.float32) + b_all_ref[...]   # (Bt*S, Ntot) f32
    qkv = qkv.reshape(Bt, S, 2 * H * Da + H * Dv)                    # last dim unchanged

    scale = 1.0 / math.sqrt(Da)
    q_all = qkv[:, :, :H * Da] * scale        # fold 1/sqrt(Da) into q (S*H*Da muls, not S*S)
    k_all = qkv[:, :, H * Da:2 * H * Da]
    v_all = qkv[:, :, 2 * H * Da:]

    # ---- per-head (S x S) attention; small static unroll over heads ----
    head_outs = []
    for h in range(H):
        q = q_all[:, :, h * Da:(h + 1) * Da].astype(jnp.bfloat16)    # (Bt, S, Da)
        k = k_all[:, :, h * Da:(h + 1) * Da].astype(jnp.bfloat16)
        v = v_all[:, :, h * Dv:(h + 1) * Dv].astype(jnp.bfloat16)

        # QK^T contracting on the last dims (no materialized transpose).
        s = jnp.einsum("bqd,bkd->bqk", q, k,
                       preferred_element_type=jnp.float32)           # (Bt, S, S) f32
        s = s - jnp.max(s, axis=-1, keepdims=True)                   # stable softmax, f32
        p = jnp.exp(s)
        p = p * pl.reciprocal(jnp.sum(p, axis=-1, keepdims=True), approx=True)

        head_outs.append(
            jnp.einsum("bqk,bkd->bqd", p.astype(jnp.bfloat16), v,
                       preferred_element_type=jnp.float32))          # (Bt, S, Dv)

    # ---- fused output projection: one matmul replaces H accumulate-dots ----
    o_all = jnp.concatenate(head_outs, axis=-1)                      # (Bt, S, H*Dv), cols h*Dv+d
    o2 = o_all.reshape(Bt * S, H * Dv).astype(jnp.bfloat16)
    y = jnp.dot(o2, wfc_ref[...], preferred_element_type=jnp.float32)  # (Bt*S, Dv)
    o_ref[...] = y.reshape(Bt, S, Dv).astype(o_ref.dtype)


def _pick_batch_tile(B, S):
    """Largest divisor of B so Bt*S ~ a few hundred rows per grid step."""
    bt = max(1, min(B, max(1, 512 // max(S, 1))))
    while B % bt:
        bt -= 1
    return bt


def multi_head_attention_block(x, params, *, n_heads, dim_attn):
    """x: (B, S, dim_val) float32. params: PyTorch nn.Linear-convention weights."""
    Wq, bq, Wk, bk, Wv, bv, Wfc = params
    B, S, Dv = x.shape
    H, Da = n_heads, dim_attn
    Ntot = 2 * H * Da + H * Dv

    # ---- weight re-layout glue (plain JAX, one-time, outside the kernel) ----
    # Fused projection weight (Dv, Ntot): x @ W_all == [Q_all | K_all | V_all].
    wq_cat = jnp.transpose(Wq, (2, 0, 1)).reshape(Dv, H * Da)
    wk_cat = jnp.transpose(Wk, (2, 0, 1)).reshape(Dv, H * Da)
    wv_cat = jnp.transpose(Wv, (2, 0, 1)).reshape(Dv, H * Dv)
    w_all = jnp.concatenate([wq_cat, wk_cat, wv_cat], axis=1).astype(jnp.bfloat16)
    b_all = jnp.concatenate([bq.reshape(1, H * Da),
                             bk.reshape(1, H * Da),
                             bv.reshape(1, H * Dv)], axis=1).astype(jnp.float32)
    # Wfc input index is d*H + h (stack(dim=-1)+flatten); re-layout to rows h*Dv + d
    # so a head-major concat of the head outputs multiplies it exactly.
    wfc_re = jnp.transpose(Wfc.reshape(Dv, Dv, H), (2, 1, 0)).reshape(H * Dv, Dv)
    wfc_re = wfc_re.astype(jnp.bfloat16)

    Bt = _pick_batch_tile(B, S)
    grid = (B // Bt,)

    # VMEM budget from actual residency (double-buffered x/o, resident weights,
    # fused-projection + score intermediates), 2x margin, capped at 64 MiB (v7x).
    act_f32 = (4 * Bt * S * Dv            # double-buffered x + out blocks
               + Bt * S * Ntot            # fused qkv activations
               + 2 * Bt * S * S           # live score/prob tile
               + (H + 1) * Bt * S * Dv)   # head outputs + concat
    weight_bytes = 2 * (Dv * Ntot + H * Dv * Dv) + 4 * Ntot
    vmem_limit = int(min(64 * 1024 * 1024,
                         max(32 * 1024 * 1024, 2 * (4 * act_f32 + weight_bytes))))

    cost = pl.CostEstimate(
        flops=int(2 * B * S * (Dv * Ntot + H * S * (Da + Dv) + H * Dv * Dv)),
        transcendentals=int(B * H * S * S),
        bytes_accessed=int(8 * B * S * Dv + weight_bytes),
    )

    kernel = functools.partial(_mha_kernel, n_heads=H, dim_attn=Da, dim_val=Dv)

    return pl.pallas_call(
        kernel,
        out_shape=jax.ShapeDtypeStruct((B, S, Dv), x.dtype),
        grid=grid,
        in_specs=[
            pl.BlockSpec((Bt, S, Dv), lambda b: (b, 0, 0)),     # x (Bt batch rows)
            pl.BlockSpec((Dv, Ntot), lambda b: (0, 0)),         # fused W_qkv (bf16)
            pl.BlockSpec((1, Ntot), lambda b: (0, 0)),          # fused bias (f32)
            pl.BlockSpec((H * Dv, Dv), lambda b: (0, 0)),       # re-laid-out Wfc (bf16)
        ],
        out_specs=pl.BlockSpec((Bt, S, Dv), lambda b: (b, 0, 0)),
        compiler_params=pltpu.CompilerParams(
            dimension_semantics=("parallel",),
            vmem_limit_bytes=vmem_limit),
        cost_estimate=cost,
    )(x, w_all, b_all, wfc_re)


def _init_params(key, dim_val, dim_attn, n_heads):
    """Deterministic nn.Linear-style init (uniform +/- 1/sqrt(fan_in))."""
    ks = jax.random.split(key, 7)
    u = lambda k, shape, fan_in: jax.random.uniform(
        k, shape, jnp.float32, -1.0 / math.sqrt(fan_in), 1.0 / math.sqrt(fan_in))
    Wq = u(ks[0], (n_heads, dim_attn, dim_val), dim_val)
    bq = u(ks[1], (n_heads, dim_attn), dim_val)
    Wk = u(ks[2], (n_heads, dim_attn, dim_val), dim_val)
    bk = u(ks[3], (n_heads, dim_attn), dim_val)
    Wv = u(ks[4], (n_heads, dim_val, dim_val), dim_val)
    bv = u(ks[5], (n_heads, dim_val), dim_val)
    Wfc = u(ks[6], (dim_val, n_heads * dim_val), n_heads * dim_val)
    return Wq, bq, Wk, bk, Wv, bv, Wfc


def _reference_forward(x, params, *, n_heads, dim_attn):
    """Pure-JAX (f32) transliteration of the PyTorch module (for verification)."""
    Wq, bq, Wk, bk, Wv, bv, Wfc = params
    outs = []
    for h in range(n_heads):
        q = x @ Wq[h].T + bq[h]
        k = x @ Wk[h].T + bk[h]
        v = x @ Wv[h].T + bv[h]
        s = jnp.einsum("bsa,bta->bst", q, k) / jnp.sqrt(jnp.float32(dim_attn))
        a = jax.nn.softmax(s, axis=-1)
        outs.append(jnp.einsum("bst,btd->bsd", a, v))
    a = jnp.stack(outs, axis=-1)                       # (B, S, Dv, H)
    a = a.reshape(a.shape[0], a.shape[1], -1)          # flatten(start_dim=2)
    return a @ Wfc.T


if __name__ == "__main__":
    B, S = 2, 8
    dim_val, dim_attn, n_heads = 32, 16, 2

    key = jax.random.PRNGKey(0)
    kx, kp = jax.random.split(key)
    x = jax.random.normal(kx, (B, S, dim_val), jnp.float32)
    params = _init_params(kp, dim_val, dim_attn, n_heads)

    out = multi_head_attention_block(x, params, n_heads=n_heads, dim_attn=dim_attn)
    out = jax.block_until_ready(out)

    ref = _reference_forward(x, params, n_heads=n_heads, dim_attn=dim_attn)
    # Tolerance loosened vs the f32 reference because MXU operands run in bf16
    # (f32 accumulation) and the softmax denominator uses approx reciprocal.
    np.testing.assert_allclose(np.asarray(out), np.asarray(ref), rtol=5e-2, atol=3e-2)

    print("KERNEL_OK")
</pallas_src>

<mosaic_0001>
module attributes {stable_mosaic.version = 11 : i64} {
  func.func @_mha_kernel(%arg0: i32, %arg1: memref<2x8x32xf32, #tpu.memory_space<vmem>>, %arg2: memref<32x128xbf16, #tpu.memory_space<vmem>>, %arg3: memref<1x128xf32, #tpu.memory_space<vmem>>, %arg4: memref<64x32xbf16, #tpu.memory_space<vmem>>, %arg5: memref<2x8x32xf32, #tpu.memory_space<vmem>>) attributes {dimension_semantics = [#tpu.dimension_semantics<parallel>], iteration_bounds = array<i64: 1>, scalar_prefetch = 0 : i64, scratch_operands = 0 : i64, tpu.core_type = #tpu.core_type<tc>, window_params = [{transform_indices = @transform_0, window_bounds = array<i64: 2, 8, 32>}, {pipeline_mode = #tpu.pipeline_mode<synchronous>, transform_indices = @transform_1, window_bounds = array<i64: 32, 128>}, {pipeline_mode = #tpu.pipeline_mode<synchronous>, transform_indices = @transform_2, window_bounds = array<i64: 1, 128>}, {pipeline_mode = #tpu.pipeline_mode<synchronous>, transform_indices = @transform_3, window_bounds = array<i64: 64, 32>}, {transform_indices = @transform_4, window_bounds = array<i64: 2, 8, 32>}]} {
    %c0 = arith.constant 0 : index
    %c0_0 = arith.constant 0 : index
    %c0_1 = arith.constant 0 : index
    %0 = vector.load %arg1[%c0, %c0_0, %c0_1] : memref<2x8x32xf32, #tpu.memory_space<vmem>>, vector<2x8x32xf32>
    %1 = vector.shape_cast %0 : vector<2x8x32xf32> to vector<16x32xf32>
    %2 = arith.truncf %1 : vector<16x32xf32> to vector<16x32xbf16>
    %c0_2 = arith.constant 0 : index
    %c0_3 = arith.constant 0 : index
    %3 = vector.load %arg2[%c0_2, %c0_3] : memref<32x128xbf16, #tpu.memory_space<vmem>>, vector<32x128xbf16>
    %cst = arith.constant dense<0.000000e+00> : vector<16x128xf32>
    %4 = tpu.matmul %2, %3, %cst {dimension_numbers = #tpu.dot_dimension_numbers<[1], [0], [0], [1], [0, 0, 1, 1], [], []>} : vector<16x32xbf16>, vector<32x128xbf16>, vector<16x128xf32> -> vector<16x128xf32>
    %c0_4 = arith.constant 0 : index
    %c0_5 = arith.constant 0 : index
    %5 = vector.load %arg3[%c0_4, %c0_5] : memref<1x128xf32, #tpu.memory_space<vmem>>, vector<1x128xf32>
    %6 = vector.broadcast %5 : vector<1x128xf32> to vector<16x128xf32>
    %7 = arith.addf %4, %6 : vector<16x128xf32>
    %8 = vector.shape_cast %7 : vector<16x128xf32> to vector<2x8x128xf32>
    %9 = vector.extract_strided_slice %8 {offsets = [0, 0, 0], sizes = [2, 8, 32], strides = [1, 1, 1]} : vector<2x8x128xf32> to vector<2x8x32xf32>
    %cst_6 = arith.constant 2.500000e-01 : f32
    %10 = vector.broadcast %cst_6 : f32 to vector<2x8x32xf32>
    %11 = arith.mulf %9, %10 : vector<2x8x32xf32>
    %12 = vector.extract_strided_slice %8 {offsets = [0, 0, 32], sizes = [2, 8, 32], strides = [1, 1, 1]} : vector<2x8x128xf32> to vector<2x8x32xf32>
    %13 = vector.extract_strided_slice %8 {offsets = [0, 0, 64], sizes = [2, 8, 64], strides = [1, 1, 1]} : vector<2x8x128xf32> to vector<2x8x64xf32>
    %14 = vector.extract_strided_slice %11 {offsets = [0, 0, 0], sizes = [2, 8, 16], strides = [1, 1, 1]} : vector<2x8x32xf32> to vector<2x8x16xf32>
    %15 = arith.truncf %14 : vector<2x8x16xf32> to vector<2x8x16xbf16>
    %16 = vector.extract_strided_slice %12 {offsets = [0, 0, 0], sizes = [2, 8, 16], strides = [1, 1, 1]} : vector<2x8x32xf32> to vector<2x8x16xf32>
    %17 = arith.truncf %16 : vector<2x8x16xf32> to vector<2x8x16xbf16>
    %18 = vector.extract_strided_slice %13 {offsets = [0, 0, 0], sizes = [2, 8, 32], strides = [1, 1, 1]} : vector<2x8x64xf32> to vector<2x8x32xf32>
    %19 = arith.truncf %18 : vector<2x8x32xf32> to vector<2x8x32xbf16>
    "tpu.trace_start"() <{level = 10 : i32, message = "bqd,bkd->bqk"}> : () -> ()
    %cst_7 = arith.constant dense<0.000000e+00> : vector<2x8x8xf32>
    %20 = tpu.matmul %15, %17, %cst_7 {dimension_numbers = #tpu.dot_dimension_numbers<[2], [2], [1], [1], [0, 0, 0, 1, 1, 1], [0], [0]>} : vector<2x8x16xbf16>, vector<2x8x16xbf16>, vector<2x8x8xf32> -> vector<2x8x8xf32>
    "tpu.trace_stop"() : () -> ()
    %cst_8 = arith.constant dense<0xFF800000> : vector<2x8xf32>
    %21 = vector.multi_reduction <maximumf>, %20, %cst_8 [2] : vector<2x8x8xf32> to vector<2x8xf32>
    %22 = vector.shape_cast %21 : vector<2x8xf32> to vector<2x8x1xf32>
    %23 = vector.broadcast %22 : vector<2x8x1xf32> to vector<2x8x8xf32>
    %24 = arith.subf %20, %23 : vector<2x8x8xf32>
    %25 = math.exp %24 : vector<2x8x8xf32>
    %cst_9 = arith.constant dense<0.000000e+00> : vector<2x8xf32>
    %26 = vector.multi_reduction <add>, %25, %cst_9 [2] : vector<2x8x8xf32> to vector<2x8xf32>
    %27 = vector.shape_cast %26 : vector<2x8xf32> to vector<2x8x1xf32>
    %28 = tpu.reciprocal %27 {approx = true} : vector<2x8x1xf32> -> vector<2x8x1xf32>
    %29 = vector.broadcast %28 : vector<2x8x1xf32> to vector<2x8x8xf32>
    %30 = arith.mulf %25, %29 : vector<2x8x8xf32>
    %31 = arith.truncf %30 : vector<2x8x8xf32> to vector<2x8x8xbf16>
    "tpu.trace_start"() <{level = 10 : i32, message = "bqk,bkd->bqd"}> : () -> ()
    %cst_10 = arith.constant dense<0.000000e+00> : vector<2x8x32xf32>
    %32 = tpu.matmul %31, %19, %cst_10 {dimension_numbers = #tpu.dot_dimension_numbers<[2], [1], [1], [2], [0, 0, 0, 1, 1, 2], [0], [0]>} : vector<2x8x8xbf16>, vector<2x8x32xbf16>, vector<2x8x32xf32> -> vector<2x8x32xf32>
    "tpu.trace_stop"() : () -> ()
    %33 = vector.extract_strided_slice %11 {offsets = [0, 0, 16], sizes = [2, 8, 16], strides = [1, 1, 1]} : vector<2x8x32xf32> to vector<2x8x16xf32>
    %34 = arith.truncf %33 : vector<2x8x16xf32> to vector<2x8x16xbf16>
    %35 = vector.extract_strided_slice %12 {offsets = [0, 0, 16], sizes = [2, 8, 16], strides = [1, 1, 1]} : vector<2x8x32xf32> to vector<2x8x16xf32>
    %36 = arith.truncf %35 : vector<2x8x16xf32> to vector<2x8x16xbf16>
    %37 = vector.extract_strided_slice %13 {offsets = [0, 0, 32], sizes = [2, 8, 32], strides = [1, 1, 1]} : vector<2x8x64xf32> to vector<2x8x32xf32>
    %38 = arith.truncf %37 : vector<2x8x32xf32> to vector<2x8x32xbf16>
    "tpu.trace_start"() <{level = 10 : i32, message = "bqd,bkd->bqk"}> : () -> ()
    %cst_11 = arith.constant dense<0.000000e+00> : vector<2x8x8xf32>
    %39 = tpu.matmul %34, %36, %cst_11 {dimension_numbers = #tpu.dot_dimension_numbers<[2], [2], [1], [1], [0, 0, 0, 1, 1, 1], [0], [0]>} : vector<2x8x16xbf16>, vector<2x8x16xbf16>, vector<2x8x8xf32> -> vector<2x8x8xf32>
    "tpu.trace_stop"() : () -> ()
    %cst_12 = arith.constant dense<0xFF800000> : vector<2x8xf32>
    %40 = vector.multi_reduction <maximumf>, %39, %cst_12 [2] : vector<2x8x8xf32> to vector<2x8xf32>
    %41 = vector.shape_cast %40 : vector<2x8xf32> to vector<2x8x1xf32>
    %42 = vector.broadcast %41 : vector<2x8x1xf32> to vector<2x8x8xf32>
    %43 = arith.subf %39, %42 : vector<2x8x8xf32>
    %44 = math.exp %43 : vector<2x8x8xf32>
    %cst_13 = arith.constant dense<0.000000e+00> : vector<2x8xf32>
    %45 = vector.multi_reduction <add>, %44, %cst_13 [2] : vector<2x8x8xf32> to vector<2x8xf32>
    %46 = vector.shape_cast %45 : vector<2x8xf32> to vector<2x8x1xf32>
    %47 = tpu.reciprocal %46 {approx = true} : vector<2x8x1xf32> -> vector<2x8x1xf32>
    %48 = vector.broadcast %47 : vector<2x8x1xf32> to vector<2x8x8xf32>
    %49 = arith.mulf %44, %48 : vector<2x8x8xf32>
    %50 = arith.truncf %49 : vector<2x8x8xf32> to vector<2x8x8xbf16>
    "tpu.trace_start"() <{level = 10 : i32, message = "bqk,bkd->bqd"}> : () -> ()
    %cst_14 = arith.constant dense<0.000000e+00> : vector<2x8x32xf32>
    %51 = tpu.matmul %50, %38, %cst_14 {dimension_numbers = #tpu.dot_dimension_numbers<[2], [1], [1], [2], [0, 0, 0, 1, 1, 2], [0], [0]>} : vector<2x8x8xbf16>, vector<2x8x32xbf16>, vector<2x8x32xf32> -> vector<2x8x32xf32>
    "tpu.trace_stop"() : () -> ()
    %52 = tpu.concatenate %32, %51 in 2 : vector<2x8x32xf32>, vector<2x8x32xf32> -> vector<2x8x64xf32>
    %53 = vector.shape_cast %52 : vector<2x8x64xf32> to vector<16x64xf32>
    %54 = arith.truncf %53 : vector<16x64xf32> to vector<16x64xbf16>
    %c0_15 = arith.constant 0 : index
    %c0_16 = arith.constant 0 : index
    %55 = vector.load %arg4[%c0_15, %c0_16] : memref<64x32xbf16, #tpu.memory_space<vmem>>, vector<64x32xbf16>
    %cst_17 = arith.constant dense<0.000000e+00> : vector<16x32xf32>
    %56 = tpu.matmul %54, %55, %cst_17 {dimension_numbers = #tpu.dot_dimension_numbers<[1], [0], [0], [1], [0, 0, 1, 1], [], []>} : vector<16x64xbf16>, vector<64x32xbf16>, vector<16x32xf32> -> vector<16x32xf32>
    %57 = vector.shape_cast %56 : vector<16x32xf32> to vector<2x8x32xf32>
    %c0_18 = arith.constant 0 : index
    %c0_19 = arith.constant 0 : index
    %c0_20 = arith.constant 0 : index
    %58 = vector.load %arg5[%c0_18, %c0_19, %c0_20] : memref<2x8x32xf32, #tpu.memory_space<vmem>>, vector<2x8x32xf32>
    tpu.vector_store %arg5[%c0_18, %c0_19, %c0_20], %57 {strides = array<i32>} : memref<2x8x32xf32, #tpu.memory_space<vmem>>, vector<2x8x32xf32>,
    return
  }
  func.func @transform_0(%arg0: i32) -> (i32, i32, i32) {
    %c0_i32 = arith.constant 0 : i32
    %c0_i32_0 = arith.constant 0 : i32
    %c0_i32_1 = arith.constant 0 : i32
    return %arg0, %c0_i32, %c0_i32_0 : i32, i32, i32
  }
  func.func @transform_1(%arg0: i32) -> (i32, i32) {
    %c0_i32 = arith.constant 0 : i32
    %c0_i32_0 = arith.constant 0 : i32
    %c0_i32_1 = arith.constant 0 : i32
    return %c0_i32, %c0_i32_0 : i32, i32
  }
  func.func @transform_2(%arg0: i32) -> (i32, i32) {
    %c0_i32 = arith.constant 0 : i32
    %c0_i32_0 = arith.constant 0 : i32
    %c0_i32_1 = arith.constant 0 : i32
    return %c0_i32, %c0_i32_0 : i32, i32
  }
  func.func @transform_3(%arg0: i32) -> (i32, i32) {
    %c0_i32 = arith.constant 0 : i32
    %c0_i32_0 = arith.constant 0 : i32
    %c0_i32_1 = arith.constant 0 : i32
    return %c0_i32, %c0_i32_0 : i32, i32
  }
  func.func @transform_4(%arg0: i32) -> (i32, i32, i32) {
    %c0_i32 = arith.constant 0 : i32
    %c0_i32_0 = arith.constant 0 : i32
    %c0_i32_1 = arith.constant 0 : i32
    return %arg0, %c0_i32, %c0_i32_0 : i32, i32, i32
  }
}

</mosaic_0001>

<bundles_post_ra>
// kernel: tpu_custom_call.1
= control target key start
LH: loop header
LB: loop body
LE: loop exit
PB: predicated region body
PF: predicated region fallthrough
CT: control target
= control target key end

     0   :  { %v815_v1 = vmov 0.0   ;;  %vm816_vm0 = vmmov 0   ;;  %s973_s0 = inlined_call_operand.vmem [shape: f32[2,8,32], index: 0, kind: input, shape index: {}]   ;;  %s974_s1 = inlined_call_operand.vmem [shape: bf16[32,128], index: 1, kind: input, shape index: {}]   ;;  %s975_s2 = inlined_call_operand.vmem [shape: f32[1,128], index: 2, kind: input, shape index: {}]   ;;  %s976_s3 = inlined_call_operand.vmem [shape: bf16[64,32], index: 3, kind: input, shape index: {}]   ;;  %s977_s4 = inlined_call_operand.hbm [shape: f32[2,8,32], index: 4, kind: output, shape index: {}]  }
   0x1   :  { %v769_v0 = vld [vmem:[%s974_s1] sm:$0xff]   ;;  %686 = vmatprep.subr.bf16.mxu0 %v815_v1  ;;  %694 = vmatprep.subr.bf16.mxu1 %v815_v1  ;;  %v770_v2 = vld [vmem:[%s974_s1 + $0x8] sm:$0xff]  }
   0x2   :  { %687 = vmatpush3.bf16.msra.mxu0 %v769_v0  ;;  %690 = vmatprep.mubr.msk.bf16.mxu0 %vm816_vm0, %v815_v1  ;;  %v19_v3 = vld [vmem:[%s973_s0] sm:$0xff]  ;;  %v20_v4 = vld [vmem:[%s973_s0 + $0x8] sm:$0xff] }
   0x3   :  { %688 = vmatprep.subr.bf16.mxu0 %v815_v1  ;;  %696 = vmatprep.mubr.msk.bf16.mxu1 %vm816_vm0, %v815_v1  ;;  %v21_v5 = vpack.c.bf16 %v20_v4, %v19_v3 }
   0x4   :  { %9 = vsyncpa [#allocation3], 0  ;;  %vm45_vm1 = vcmask 261120   ;;  %v645_v6 = vld [vmem:[%s975_s2] ss:$0 sm:$0xff]  ;;  %s817_s0 = smov 96  }
   0x5   :  { %vm99_vm2 = vcmask 130048   ;;  %vm195_vm3 = vcmask 64512   ;;  %s818_s2 = smov 64   ;;  %s819_s24 = smov 80   ;;  %vm225_vm4 = vcmask 1043456   ;;  %vm582_vm5 = vcmask 523264  }
   0x6   :  { %689 = vmatpush3.bf16.msra.mxu0 %v770_v2  ;;  %s820_s25 = smov 112   ;;  %s821_s26 = smov 32  }
   0x7   :  { %700 = vmatprep.subr.bf16.mxu0 %v815_v1 }
   0x9   :  { %691 = vmatmul.mubr.msk.bf16.vlgmr.msra.gmra.mrb[0].mxu0 %vm45_vm1, %v21_v5 }
   0xa   :  { %702 = vmatprep.mubr.msk.bf16.mxu0 %vm816_vm0, %v815_v1 }
  0xdc   :  { %v83_v7 = vpop.f32.mrb[0].mxu0 }
  0xdd   :  { %v84_v8 = vadd.f32 %v645_v6, %v83_v7  ;;  %v692_v9 = vpop.f32.mrb[1].mxu0 }
  0xde   :  { %v86_v10 = vpop.f32.mrb[2].mxu0 }
  0xdf   :  { %v876_v11 = vpack.c.bf16 %v84_v8, %v84_v8  ;;  %v87_v12 = vadd.f32 %v645_v6, %v86_v10  ;;  %v693_v13 = vpop.f32.mrb[3].mxu0  ;;  %v90_v17 = vmul.f32 0.25, %v84_v8 }
  0xe1   :  { %97 = vrot.lane.b32.xlu0 %v876_v11, %s817_s0  ;;  %v879_v14 = vpack.c.bf16 %v87_v12, %v87_v12  ;;  %v92_v20 = vpack.c.bf16 %v90_v17, %v90_v17  ;;  %v91_v21 = vmul.f32 0.25, %v87_v12 }
  0xe3   :  { %v93_v22 = vpack.c.bf16 %v91_v21, %v91_v21 }
  0xe5   :  { %147 = vrot.lane.b32.xlu0 %v879_v14, %s817_s0 }
 0x153   :  { %v98_v15 = vpop.permute.xlu0 %97 }
 0x154   :  { %v104_v16 = vsel %vm99_vm2, %v98_v15, 0 }
 0x155   :  { %695 = vmatpush3.bf16.xpose.msra.mxu1 %v104_v16 }
 0x156   :  { %706 = vmatprep.subr.bf16.mxu1 %v815_v1 }
 0x157   :  { %v148_v18 = vpop.permute.xlu0 %147 }
 0x158   :  { %v153_v19 = vsel %vm99_vm2, %v148_v18, 0 }
 0x159   :  { %701 = vmatpush3.bf16.xpose.msra.mxu0 %v153_v19 }
 0x15a   :  { %712 = vmatprep.subr.bf16.mxu0 %v815_v1 }
 0x15c   :  { %697 = vmatmul.mubr.msk.bf16.vlgmr.msra.gmra.mrb[0].mxu1 %vm99_vm2, %v92_v20 }
 0x15d   :  { %708 = vmatprep.mubr.msk.bf16.mxu1 %vm816_vm0, %v815_v1 }
 0x160   :  { %703 = vmatmul.mubr.msk.bf16.vlgmr.msra.gmra.mrb[4].mxu0 %vm99_vm2, %v93_v22 }
 0x161   :  { %714 = vmatprep.mubr.msk.bf16.mxu0 %vm816_vm0, %v815_v1 }
 0x22f   :  { %v140_v23 = vpop.f32.mrb[0].mxu1 }
 0x230   :  { %v698_v24 = vpop.f32.mrb[1].mxu1  ;;  %v196_v25 = vsel %vm195_vm3, %v140_v23, -inf }
 0x231   :  { %197 = vmax.xlane.f32.xlu1 %v196_v25  ;;  %v143_v26 = vpop.f32.mrb[2].mxu1 }
 0x232   :  { %v699_v27 = vpop.f32.mrb[3].mxu1 }
 0x233   :  { %v189_v28 = vpop.f32.mrb[4].mxu0 }
 0x234   :  { %v704_v29 = vpop.f32.mrb[5].mxu0  ;;  %v199_v30 = vsel %vm195_vm3, %v189_v28, -inf }
 0x235   :  { %200 = vmax.xlane.f32.xlu1 %v199_v30  ;;  %v192_v31 = vpop.f32.mrb[6].mxu0 }
 0x236   :  { %v705_v32 = vpop.f32.mrb[7].mxu0 }
 0x246   :  { %220 = vrot.lane.b32.xlu1 %v876_v11, %s818_s2 }
 0x24a   :  { %269 = vrot.lane.b32.xlu1 %v879_v14, %s818_s2 }
 0x24e   :  { %320 = vrot.lane.b32.xlu1 %v876_v11, %s819_s24 }
 0x2be   :  { %v198_v33 = vpop.xlane.xlu1 %197 }
 0x2bf   :  { %v202_v34 = vsub.f32 %v140_v23, %v198_v33 }
 0x2c1   :  { %v204_v35 = vmul.f32 1.442695, %v202_v34 }
 0x2c2   :  { %v201_v36 = vpop.xlane.xlu1 %200 }
 0x2c3   :  { %775 = vpow2.f32 %v204_v35  ;;  %v203_v37 = vsub.f32 %v189_v28, %v201_v36 }
 0x2c5   :  { %v206_v38 = vmul.f32 1.442695, %v203_v37 }
 0x2c6   :  { %v221_v39 = vpop.permute.xlu1 %220 }
 0x2c7   :  { %777 = vpow2.f32 %v206_v38  ;;  %v227_v40 = vsel %vm225_vm4, %v221_v39, 0  ;;  %v771_v38 = vld [vmem:[%s976_s3] sm:$0xff]   ;;  %v772_v39 = vld [vmem:[%s976_s3 + $0x8] sm:$0xff]  }
 0x2c8   :  { %707 = vmatpush3.bf16.msra.mxu1 %v227_v40  ;;  %v773_v40 = vld [vmem:[%s976_s3 + $0x10] sm:$0xff]  }
 0x2c9   :  { %718 = vmatprep.subr.bf16.mxu1 %v815_v1 }
 0x2ca   :  { %v270_v41 = vpop.permute.xlu1 %269 }
 0x2cb   :  { %v275_v42 = vsel %vm225_vm4, %v270_v41, 0  ;;  %v774_v41 = vld [vmem:[%s976_s3 + $0x18] sm:$0xff]   ;;  %s822_s3 = smov [#allocation2]  }
 0x2cc   :  { %713 = vmatpush3.bf16.msra.mxu0 %v275_v42  ;;  %s634_s9 = sshll.u32 %s822_s3, 4  ;;  %s635_s9 = int_to_ptr.vmem [resolvable:$true] %s634_s9 }
 0x2cd   :  { %v776_v43 = vpop.eup %775  ;;  %724 = vmatprep.subr.bf16.mxu0 %v815_v1  ;;  %s791_s10 = scalar_lea.vmem %s635_s9, 256  ;;  %p796_p1 = scmp.lt.s32.totalorder %s635_s9, %s635_s9 }
 0x2ce   :  { %v208_v44 = vsel %vm195_vm3, %v776_v43, 0.0  ;;  %v321_v47 = vpop.permute.xlu1 %320  ;;  %p792_p0 = scmp.ne.s32.totalorder %s635_s9, %s791_s10  ;;  %p797_p2 = scmp.lt.s32.totalorder %s791_s10, %s791_s10 }
 0x2cf   :  { %209 = vadd.xlane.f32.xlu0 %v208_v44  ;;  %v326_v54 = vsel %vm99_vm2, %v321_v47, 0 }
 0x2d0   :  { %p798_p3 = por %p797_p2, %p796_p1 }
 0x2d1   :  { %v778_v45 = vpop.eup %777 }
 0x2d2   :  { %v211_v46 = vsel %vm195_vm3, %v778_v45, 0.0  ;;  %p799_p4 = pnand %p798_p3, %p792_p0 }
 0x2d3   :  { %212 = vadd.xlane.f32.xlu1 %v211_v46 }
 0x2e4   :  { %371 = vrot.lane.b32.xlu1 %v879_v14, %s819_s24 }
 0x2e5   :  { %318 = vrot.lane.b32.xlu0 %v92_v20, %s820_s25 }
 0x2e8   :  { %369 = vrot.lane.b32.xlu1 %v93_v22, %s820_s25 }
 0x35c   :  { %v210_v48 = vpop.xlane.xlu0 %209 }
 0x35d   :  { %779 = vrcp.f32 %v210_v48 }
 0x360   :  { %v213_v49 = vpop.xlane.xlu1 %212  ;;  %v319_v59 = vpop.permute.xlu0 %318 }
 0x361   :  { %781 = vrcp.f32 %v213_v49 }
 0x364   :  { %v372_v56 = vpop.permute.xlu1 %371 }
 0x365   :  { %v377_v58 = vsel %vm99_vm2, %v372_v56, 0 }
 0x367   :  { %v780_v50 = vpop.eup %779 }
 0x368   :  { %v216_v51 = vmul.f32 %v780_v50, %v776_v43  ;;  %v370_v60 = vpop.permute.xlu1 %369 }
 0x36a   :  { %v218_v52 = vpack.c.bf16 %v216_v51, %v216_v51 }
 0x36b   :  { %v782_v53 = vpop.eup %781 }
 0x36c   :  { %v217_v55 = vmul.f32 %v782_v53, %v778_v45  ;;  %709 = vmatmul.mubr.msk.bf16.vlgmr.msra.gmra.mrb[4].mxu1 %vm195_vm3, %v218_v52 }
 0x36d   :  { %719 = vmatpush3.bf16.xpose.msra.mxu1 %v326_v54  ;;  %720 = vmatprep.mubr.msk.bf16.mxu1 %vm816_vm0, %v815_v1 }
 0x36e   :  { %v219_v57 = vpack.c.bf16 %v217_v55, %v217_v55  ;;  %730 = vmatprep.subr.bf16.mxu1 %v815_v1 }
 0x370   :  { %715 = vmatmul.mubr.msk.bf16.vlgmr.msra.gmra.mrb[8].mxu0 %vm195_vm3, %v219_v57 }
 0x371   :  { %725 = vmatpush3.bf16.xpose.msra.mxu0 %v377_v58  ;;  %726 = vmatprep.mubr.msk.bf16.mxu0 %vm816_vm0, %v815_v1 }
 0x372   :  { %736 = vmatprep.subr.bf16.mxu0 %v815_v1 }
 0x374   :  { %721 = vmatmul.mubr.msk.bf16.vlgmr.msra.gmra.mrb[8].mxu1 %vm99_vm2, %v319_v59 }
 0x375   :  { %732 = vmatprep.mubr.msk.bf16.mxu1 %vm816_vm0, %v815_v1 }
 0x378   :  { %727 = vmatmul.mubr.msk.bf16.vlgmr.msra.gmra.mrb[12].mxu0 %vm99_vm2, %v370_v60 }
 0x379   :  { %738 = vmatprep.mubr.msk.bf16.mxu0 %vm816_vm0, %v815_v1 }
 0x43f   :  { %v920_v61 = vpop.f32.mrb[4].mxu1 }
 0x440   :  { %v710_v62 = vpop.f32.mrb[5].mxu1 }
 0x441   :  { %v266_v63 = vpop.f32.mrb[6].mxu1 }
 0x442   :  { %v711_v0 = vpop.f32.mrb[7].mxu1 }
 0x443   :  { %v922_v2 = vpop.f32.mrb[8].mxu0 }
 0x444   :  { %v716_v3 = vpop.f32.mrb[9].mxu0 }
 0x445   :  { %v314_v4 = vpop.f32.mrb[10].mxu0 }
 0x446   :  { %v717_v5 = vpop.f32.mrb[11].mxu0 }
 0x447   :  { %v362_v6 = vpop.f32.mrb[8].mxu1 }
 0x448   :  { %v722_v7 = vpop.f32.mrb[9].mxu1  ;;  %v419_v8 = vsel %vm195_vm3, %v362_v6, -inf }
 0x449   :  { %420 = vmax.xlane.f32.xlu1 %v419_v8  ;;  %v365_v9 = vpop.f32.mrb[10].mxu1 }
 0x44a   :  { %v723_v10 = vpop.f32.mrb[11].mxu1 }
 0x44b   :  { %v413_v12 = vpop.f32.mrb[12].mxu0 }
 0x44c   :  { %v728_v13 = vpop.f32.mrb[13].mxu0  ;;  %v422_v15 = vsel %vm195_vm3, %v413_v12, -inf }
 0x44d   :  { %423 = vmax.xlane.f32.xlu0 %v422_v15  ;;  %v416_v16 = vpop.f32.mrb[14].mxu0 }
 0x44e   :  { %v729_v17 = vpop.f32.mrb[15].mxu0 }
 0x463   :  { %491 = vrot.lane.b32.xlu0 %v879_v14, %s821_s26 }
 0x4d6   :  { %v421_v18 = vpop.xlane.xlu1 %420 }
 0x4d7   :  { %v425_v19 = vsub.f32 %v362_v6, %v421_v18 }
 0x4d9   :  { %v427_v20 = vmul.f32 1.442695, %v425_v19 }
 0x4da   :  { %v424_v21 = vpop.xlane.xlu0 %423 }
 0x4db   :  { %783 = vpow2.f32 %v427_v20  ;;  %v426_v22 = vsub.f32 %v413_v12, %v424_v21 }
 0x4dd   :  { %v429_v23 = vmul.f32 1.442695, %v426_v22 }
 0x4de   :  { %v492_v24 = vpop.permute.xlu0 %491 }
 0x4df   :  { %785 = vpow2.f32 %v429_v23  ;;  %v497_v25 = vsel %vm225_vm4, %v492_v24, 0 }
 0x4e0   :  { %737 = vmatpush3.bf16.msra.mxu0 %v497_v25 }
 0x4e5   :  { %v784_v26 = vpop.eup %783 }
 0x4e6   :  { %v431_v27 = vsel %vm195_vm3, %v784_v26, 0.0 }
 0x4e7   :  { %432 = vadd.xlane.f32.xlu1 %v431_v27 }
 0x4e9   :  { %v786_v28 = vpop.eup %785 }
 0x4ea   :  { %v434_v29 = vsel %vm195_vm3, %v786_v28, 0.0 }
 0x4eb   :  { %435 = vadd.xlane.f32.xlu1 %v434_v29 }
 0x4fc   :  { %443 = vrot.lane.b32.xlu1 %v876_v11, %s821_s26 }
 0x574   :  { %v433_v14 = vpop.xlane.xlu1 %432 }
 0x575   :  { %787 = vrcp.f32 %v433_v14 }
 0x578   :  { %v436_v30 = vpop.xlane.xlu1 %435 }
 0x579   :  { %789 = vrcp.f32 %v436_v30 }
 0x57c   :  { %v444_v31 = vpop.permute.xlu1 %443 }
 0x57d   :  { %v449_v32 = vsel %vm225_vm4, %v444_v31, 0 }
 0x57e   :  { %731 = vmatpush3.bf16.msra.mxu1 %v449_v32 }
 0x57f   :  { %v788_v33 = vpop.eup %787  ;;  %742 = vmatprep.subr.bf16.mxu1 %v815_v1 }
 0x580   :  { %v439_v34 = vmul.f32 %v788_v33, %v784_v26 }
 0x582   :  { %v441_v35 = vpack.c.bf16 %v439_v34, %v439_v34 }
 0x583   :  { %v790_v36 = vpop.eup %789 }
 0x584   :  { %v440_v37 = vmul.f32 %v790_v36, %v786_v28  ;;  %733 = vmatmul.mubr.msk.bf16.vlgmr.msra.gmra.mrb[12].mxu1 %vm195_vm3, %v441_v35 }
 0x585   :  { %750 = vmatprep.mubr.msk.bf16.mxu1 %vm816_vm0, %v815_v1  ;;  %743 = vmatpush3.bf16.msra.mxu1 %v771_v38 }
 0x586   :  { %v442_v11 = vpack.c.bf16 %v440_v37, %v440_v37  ;;  %744 = vmatprep.subr.bf16.mxu1 %v815_v1 }
 0x588   :  { %739 = vmatmul.mubr.msk.bf16.vlgmr.msra.gmra.mrb[16].mxu0 %vm195_vm3, %v442_v11 }
 0x589   :  { %745 = vmatpush3.bf16.msra.mxu1 %v772_v39 }
 0x58a   :  { %746 = vmatprep.subr.bf16.mxu1 %v815_v1 }
 0x58d   :  { %747 = vmatpush3.bf16.msra.mxu1 %v773_v40 }
 0x58e   :  { %748 = vmatprep.subr.bf16.mxu1 %v815_v1 }
 0x591   :  { %749 = vmatpush3.bf16.msra.mxu1 %v774_v41 }
 0x657   :  { %v485_v42 = vpop.f32.mrb[12].mxu1 }
 0x658   :  { %v734_v43 = vpop.f32.mrb[13].mxu1 }
 0x659   :  { %v488_v44 = vpop.f32.mrb[14].mxu1 }
 0x65a   :  { %v735_v45 = vpop.f32.mrb[15].mxu1 }
 0x65b   :  { %v533_v46 = vpop.f32.mrb[16].mxu0 }
 0x65c   :  { %v764_v47 = vpack.i.bf16 %v533_v46, %v485_v42  ;;  %v740_v48 = vpop.f32.mrb[17].mxu0 }
 0x65d   :  { %v536_v49 = vpop.f32.mrb[18].mxu0 }
 0x65e   :  { %765 = vrot.lane.b32.xlu1 %v764_v47, %s821_s26  ;;  %v741_v50 = vpop.f32.mrb[19].mxu0 }
 0x6d0   :  { %v766_v51 = vpop.permute.xlu1 %765 }
 0x6d1   :  { %v768_v52 = vunpack.i.h.bf16 %v766_v51  ;;  %v767_v53 = vunpack.i.l.bf16 %v766_v51 }
 0x6d3   :  { %v548_v1 = vsel %vm45_vm1, %v922_v2, %v768_v52  ;;  %v547_v54 = vsel %vm45_vm1, %v920_v61, %v767_v53 }
 0x6d4   :  { %v549_v55 = vpack.c.bf16 %v548_v1, %v547_v54 }
 0x6d6   :  { %751 = vmatmul.mubr.msk.bf16.vlgmr.msra.gmra.mrb[16].mxu1 %vm582_vm5, %v549_v55 }
 0x7a9   :  { %v620_v56 = vpop.f32.mrb[16].mxu1 }
 0x7aa   :  { %627 = vst.msk [vmem:[#allocation2] sm:$0xff] %vm45_vm1, %v620_v56  ;;  %v752_v57 = vpop.f32.mrb[17].mxu1 }
 0x7ab   :  { %v623_v58 = vpop.f32.mrb[18].mxu1 }
 0x7ac   :  { %628 = vst.msk [vmem:[#allocation2 + $0x8] sm:$0xff] %vm45_vm1, %v623_v58  ;;  %v753_v59 = vpop.f32.mrb[19].mxu1 }
 0x7ad   :  { %802 = shalt.err (!%p799_p4)
}
 0x7ae   :  { %s803_s13 = scalar_lea.hbm %s977_s4, 256 }
 0x7af   :  { %p804_p5 = scmp.ne.s32.totalorder %s977_s4, %s803_s13  ;;  %p807_p6 = scmp.lt.u32.totalorder %s803_s13, %s977_s4 }
 0x7b1   :  { %p809_p7 = pnand %p807_p6, %p804_p5 }
 0x7b3   :  { %812 = shalt.err (!%p809_p7)
}
 0x7b4   :  { %s823_s18 = smov 128   ;;  %s824_s19 = smov 8  }
 0x7b5   :  { %640 = dma.vmem_to_hbm [thread:$0]  %s635_s9, 256, %s977_s4, [#allocation3], %s823_s18, %s823_s18, %s824_s19  }
 0x7b6   :  { %813 = dma.done.wait [#allocation3], 256  }
 0x7b7   :  { %814 = vsyncadd [#allocation3], 4294967040 }
 0x7b8   :  { %644 = vsyncpa [#allocation3], 1 }

</bundles_post_ra>
